<compile_context>
chip_gen: v7x
topology: tpu7x:2x2x1
jax: 0.10.0
libtpu: 0.0.40
codegen_flags: <defaults>
</compile_context>

<pallas_src>
import functools
from collections import OrderedDict

import numpy as np
import jax
import jax.numpy as jnp
from jax.experimental import pallas as pl
from jax.experimental.pallas import tpu as pltpu


# ----------------------------------------------------------------------------
# Fused Pallas kernel: conv3x3 -> bias -> ReLU -> conv3x3 -> bias
# ----------------------------------------------------------------------------
def _fused_conv_relu_conv_kernel(x_ref, w1_ref, b1_ref, w2_ref, b2_ref, s_ref,
                                 *out_refs, capture_y1):
    """One grid step processes TB images stacked along M = TB*H rows.

    x_ref : (M, W*Cin)           lane-dense rows (image-major, UNPADDED)
    w1_ref: (3, W*Cin,  W*Cmid)  per-vertical-tap Toeplitz weights (W pad folded)
    b1_ref: (1, W*Cmid)          conv1 bias, tiled per output column (f32)
    w2_ref: (3, W*Cmid, W*Cout)  per-vertical-tap Toeplitz weights for conv2
    b2_ref: (1, W*Cout)          conv2 bias (f32)
    s_ref : (2, M, M)            banded 0/1 shift matrices:
                                   (s[0] @ a)[h] = a[h-1]  (0 at image top row)
                                   (s[1] @ a)[h] = a[h+1]  (0 at image bottom)
    out_refs: (y1_ref?, y2_ref)  lane-dense (M, W*Cmid) / (M, W*Cout) outputs.
    """
    cdt = x_ref.dtype                      # bf16 under AMP, f32 otherwise
    x = x_ref[...]                         # (M, W*Cin) in compute dtype

    def conv3x3(a, w_ref):
        # Vertical taps via banded shift matmuls (per-image H-boundary zeros
        # baked into s); horizontal taps + W-boundary zeros baked into w_ref.
        a_up = jnp.dot(s_ref[0], a, preferred_element_type=jnp.float32).astype(cdt)
        a_dn = jnp.dot(s_ref[1], a, preferred_element_type=jnp.float32).astype(cdt)
        acc = jnp.dot(a_up, w_ref[0], preferred_element_type=jnp.float32)
        acc = acc + jnp.dot(a, w_ref[1], preferred_element_type=jnp.float32)
        acc = acc + jnp.dot(a_dn, w_ref[2], preferred_element_type=jnp.float32)
        return acc                          # (M, N) f32 accumulator

    y1 = conv3x3(x, w1_ref) + b1_ref[...]   # f32 epilogue
    if capture_y1:                          # hook capture only when requested
        out_refs[0][...] = y1.astype(out_refs[0].dtype)

    r1 = jnp.maximum(y1, 0.0).astype(cdt)   # fused ReLU, back to compute dtype
    y2 = conv3x3(r1, w2_ref) + b2_ref[...]
    out_refs[-1][...] = y2.astype(out_refs[-1].dtype)


# ----------------------------------------------------------------------------
# Wrapper-side helpers (one-time layout plumbing)
# ----------------------------------------------------------------------------
def _per_tap_toeplitz(w_oihw, W):
    """(Cout, Cin, 3, 3) conv weights -> (3, W*Cin, W*Cout) per-vertical-tap
    matmul weights over the UNPADDED lane-dense layout, such that
        out[h] = sum_kh  x[h + kh - 1] @ taps[kh]        (rows out of range = 0)
    reproduces a 3x3, stride-1, SAME-padding convolution."""
    w = np.asarray(jax.device_get(w_oihw), dtype=np.float32)
    co, ci, kh_sz, kw_sz = w.shape
    assert (kh_sz, kw_sz) == (3, 3), "builder assumes a 3x3 stride-1 SAME conv"
    w_hwio = np.transpose(w, (2, 3, 1, 0))                    # (3, 3, Cin, Cout)
    taps = np.zeros((3, W * ci, W * co), np.float32)
    for kh in range(3):
        for kw in range(3):
            for ow in range(W):
                iw = ow + kw - 1
                if 0 <= iw < W:                               # W-boundary zeros
                    taps[kh, iw * ci:(iw + 1) * ci,
                         ow * co:(ow + 1) * co] = w_hwio[kh, kw]
    return jnp.asarray(taps)


@functools.lru_cache(maxsize=None)
def _shift_matrices(M, H, dtype_name):
    """(2, M, M) banded 0/1 matrices shifting a stacked (TB, H) row block by
    one row down / up, with zeros at each image's H boundary (SAME padding)."""
    s = np.zeros((2, M, M), np.float32)
    for h in range(M):
        if h % H != 0:
            s[0, h, h - 1] = 1.0          # a_up[h] = a[h-1]
        if h % H != H - 1:
            s[1, h, h + 1] = 1.0          # a_dn[h] = a[h+1]
    return jnp.asarray(s, dtype=dtype_name)


def _pick_tb(B, H, target_m=256):
    """Largest divisor of B with TB*H <= target_m (fatten the MXU M dim)."""
    tb = 1
    for cand in range(1, B + 1):
        if B % cand == 0 and cand * H <= target_m:
            tb = cand
    return tb


def _lane_dense_to_nchw(y, B, H, W, C):
    """(B*H, W*C) lane-dense activation -> PyTorch NCHW tensor."""
    return jnp.transpose(y.reshape(B, H, W, C), (0, 3, 1, 2))


def fused_conv_relu_conv(x_nchw, taps1, b1t, taps2, b2t, *, cmid, cout, amp,
                         capture_y1):
    """conv1 -> ReLU -> conv2 in one pallas_call.  Returns (y1_or_None, y2)
    lane-dense (B*H, W*C) activations (bf16 under AMP, f32 otherwise)."""
    B, Cin, H, W = x_nchw.shape
    cdt = jnp.bfloat16 if amp else jnp.float32
    odt = cdt
    TB = _pick_tb(B, H)
    M = TB * H

    # Single layout pass at model entry: NCHW -> unpadded lane-dense rows.
    # No jnp.pad anywhere: W-boundary zeros live in the tap weights and the
    # H-boundary zeros in the banded shift matrices.
    x = jnp.transpose(x_nchw, (0, 2, 3, 1)).reshape(B * H, W * Cin).astype(cdt)
    s = _shift_matrices(M, H, jnp.dtype(cdt).name)

    kernel = functools.partial(_fused_conv_relu_conv_kernel,
                               capture_y1=capture_y1)
    const2 = lambda i: (0, 0)
    const3 = lambda i: (0, 0, 0)
    in_specs = [
        pl.BlockSpec((M, W * Cin), lambda i: (i, 0)),
        pl.BlockSpec(taps1.shape, const3),
        pl.BlockSpec(b1t.shape, const2),
        pl.BlockSpec(taps2.shape, const3),
        pl.BlockSpec(b2t.shape, const2),
        pl.BlockSpec(s.shape, const3),
    ]
    y1_struct = jax.ShapeDtypeStruct((B * H, W * cmid), odt)
    y2_struct = jax.ShapeDtypeStruct((B * H, W * cout), odt)
    y1_spec = pl.BlockSpec((M, W * cmid), lambda i: (i, 0))
    y2_spec = pl.BlockSpec((M, W * cout), lambda i: (i, 0))
    if capture_y1:
        out_shape, out_specs = (y1_struct, y2_struct), [y1_spec, y2_spec]
    else:
        out_shape, out_specs = y2_struct, y2_spec

    outs = pl.pallas_call(
        kernel,
        out_shape=out_shape,
        grid_spec=pltpu.PrefetchScalarGridSpec(
            num_scalar_prefetch=0,
            grid=(B // TB,),
            in_specs=in_specs,
            out_specs=out_specs,
        ),
        compiler_params=pltpu.CompilerParams(
            dimension_semantics=("parallel",)),
    )(x, taps1, b1t, taps2, b2t, s)

    if capture_y1:
        y1, y2 = outs[0], outs[1]
    else:
        y1, y2 = None, outs
    return y1, y2


# ----------------------------------------------------------------------------
# FeatureExtractorBase (JAX version, hook semantics emulated)
# ----------------------------------------------------------------------------
class FeatureExtractorBase:
    """Hook-based feature extractor with AMP emulation (bf16 on TPU).

    The concrete model is conv1 -> relu1 -> conv2; 'forward hooks' are emulated
    by emitting intermediates directly from the fused Pallas kernel (only when
    hooked) and converting only the requested layers to PyTorch NCHW layout."""

    _LAYERS = ("conv1", "relu1", "conv2")

    def __init__(self, device: str = "tpu", amp: bool = True):
        self.device = device
        self.amp = amp
        self._features = {}
        self.preprocess = None
        self._wcache = {}                # width -> prepared kernel weights

        key = jax.random.PRNGKey(0)
        k1, k2, k3, k4 = jax.random.split(key, 4)
        cin, cmid, cout = 4, 8, 8
        self.in_channels, self.cmid, self.cout = cin, cmid, cout
        self.params = {
            "conv1_w": 0.1 * jax.random.normal(k1, (cmid, cin, 3, 3), jnp.float32),
            "conv1_b": 0.1 * jax.random.normal(k2, (cmid,), jnp.float32),
            "conv2_w": 0.1 * jax.random.normal(k3, (cout, cmid, 3, 3), jnp.float32),
            "conv2_b": 0.1 * jax.random.normal(k4, (cout,), jnp.float32),
        }
        # Named leaf layers (like nn.Module.named_modules() leaves).
        self.model = OrderedDict([
            ("conv1", f"Conv2d({cin},{cmid},3,pad=1)"),
            ("relu1", "ReLU"),
            ("conv2", f"Conv2d({cmid},{cout},3,pad=1)"),
        ])

    # --- hook-style API -----------------------------------------------------
    def list_hookable_layers(self):
        return list(self.model.keys())

    def get_preprocess(self):
        return getattr(self, "preprocess", None)

    # --- internals ------------------------------------------------------------
    def _prepped_weights(self, W):
        cached = self._wcache.get(W)
        if cached is None:
            cdt = jnp.bfloat16 if self.amp else jnp.float32
            cached = (
                _per_tap_toeplitz(self.params["conv1_w"], W).astype(cdt),
                jnp.tile(self.params["conv1_b"], W).reshape(1, -1).astype(jnp.float32),
                _per_tap_toeplitz(self.params["conv2_w"], W).astype(cdt),
                jnp.tile(self.params["conv2_b"], W).reshape(1, -1).astype(jnp.float32),
            )
            self._wcache[W] = cached
        return cached

    def _run_model(self, x_nchw, hook_names):
        for name in hook_names:
            if name not in self.model:
                raise ValueError(f"Module '{name}' not found in model")
        self._features = {}
        B, C, H, W = x_nchw.shape
        taps1, b1t, taps2, b2t = self._prepped_weights(W)
        capture_y1 = ("conv1" in hook_names) or ("relu1" in hook_names)
        y1, y2 = fused_conv_relu_conv(x_nchw, taps1, b1t, taps2, b2t,
                                      cmid=self.cmid, cout=self.cout,
                                      amp=self.amp, capture_y1=capture_y1)
        # Emulated forward hooks: convert to NCHW lazily, only if requested.
        feats = {}
        if capture_y1:
            c1 = _lane_dense_to_nchw(y1, B, H, W, self.cmid)
            if "conv1" in hook_names:
                feats["conv1"] = c1
            if "relu1" in hook_names:
                # Matches torch autocast hook semantics: ReLU applied to the
                # (bf16 under AMP) conv1 activation.
                feats["relu1"] = jnp.maximum(c1, 0)
        out = _lane_dense_to_nchw(y2, B, H, W, self.cout)
        if "conv2" in hook_names:
            feats["conv2"] = out
        self._features = feats
        return out

    def _extract_features(self, x, module_names):
        names = [module_names] if isinstance(module_names, str) else module_names
        _ = self._run_model(x, names)
        outputs = {name: self._features[name] for name in names}
        return outputs[names[0]] if len(names) == 1 else outputs

    def get_feature_shapes(self, layer_names, image_size: int = 16):
        dummy = jax.random.normal(jax.random.PRNGKey(1),
                                  (1, self.in_channels, image_size, image_size),
                                  jnp.float32)
        _ = self._run_model(dummy, layer_names)
        return {name: tuple(self._features[name].shape) for name in layer_names}

    def forward(self, x, module_names):
        return self._extract_features(x, module_names)

    __call__ = forward


# ----------------------------------------------------------------------------
if __name__ == "__main__":
    B, C, H, W = 2, 4, 16, 16
    x = jax.random.normal(jax.random.PRNGKey(0), (B, C, H, W), jnp.float32)

    # --- correctness check (amp=False -> f32 compute) vs lax.conv reference --
    fx32 = FeatureExtractorBase(amp=False)
    feats = fx32(x, ["conv1", "relu1", "conv2"])

    def conv_ref(t, w, b):
        return jax.lax.conv_general_dilated(
            t, w, window_strides=(1, 1), padding="SAME",
            dimension_numbers=("NCHW", "OIHW", "NCHW"),
        ) + b[None, :, None, None]

    ref1 = conv_ref(x, fx32.params["conv1_w"], fx32.params["conv1_b"])
    refr = jnp.maximum(ref1, 0)
    ref2 = conv_ref(refr, fx32.params["conv2_w"], fx32.params["conv2_b"])
    assert feats["conv1"].shape == (B, 8, H, W)
    assert jnp.max(jnp.abs(feats["conv1"] - ref1)) < 2e-2
    assert jnp.max(jnp.abs(feats["relu1"] - refr)) < 2e-2
    assert jnp.max(jnp.abs(feats["conv2"] - ref2)) < 2e-2

    # --- AMP path (bf16 compute), hook-capture API --------------------------
    fx = FeatureExtractorBase(amp=True)
    single = fx(x, "relu1")                       # single name -> tensor
    multi = fx(x, ["conv1", "conv2"])             # list -> dict
    only_out = fx(x, "conv2")                     # no conv1 hook -> 1-output kernel
    jax.block_until_ready(single)
    jax.block_until_ready(multi["conv2"])
    jax.block_until_ready(only_out)

    assert single.shape == (B, 8, H, W) and single.dtype == jnp.bfloat16
    assert set(multi.keys()) == {"conv1", "conv2"}
    assert multi["conv2"].shape == (B, 8, H, W)
    assert only_out.shape == (B, 8, H, W)
    assert jnp.max(jnp.abs(only_out.astype(jnp.float32) - ref2)) < 5e-1  # bf16 tol
    assert fx.list_hookable_layers() == ["conv1", "relu1", "conv2"]
    shapes = fx.get_feature_shapes(["conv1", "conv2"], image_size=16)
    assert shapes["conv2"] == (1, 8, 16, 16)

    print("KERNEL_OK")
</pallas_src>

<mosaic_0001>
module attributes {stable_mosaic.version = 11 : i64} {
  func.func @_fused_conv_relu_conv_kernel(%arg0: i32, %arg1: memref<32x64xf32, #tpu.memory_space<vmem>>, %arg2: memref<3x64x128xf32, #tpu.memory_space<vmem>>, %arg3: memref<1x128xf32, #tpu.memory_space<vmem>>, %arg4: memref<3x128x128xf32, #tpu.memory_space<vmem>>, %arg5: memref<1x128xf32, #tpu.memory_space<vmem>>, %arg6: memref<2x32x32xf32, #tpu.memory_space<vmem>>, %arg7: memref<32x128xf32, #tpu.memory_space<vmem>>, %arg8: memref<32x128xf32, #tpu.memory_space<vmem>>) attributes {dimension_semantics = [#tpu.dimension_semantics<parallel>], iteration_bounds = array<i64: 1>, scalar_prefetch = 0 : i64, scratch_operands = 0 : i64, tpu.core_type = #tpu.core_type<tc>, window_params = [{transform_indices = @transform_0, window_bounds = array<i64: 32, 64>}, {pipeline_mode = #tpu.pipeline_mode<synchronous>, transform_indices = @transform_1, window_bounds = array<i64: 3, 64, 128>}, {pipeline_mode = #tpu.pipeline_mode<synchronous>, transform_indices = @transform_2, window_bounds = array<i64: 1, 128>}, {pipeline_mode = #tpu.pipeline_mode<synchronous>, transform_indices = @transform_3, window_bounds = array<i64: 3, 128, 128>}, {pipeline_mode = #tpu.pipeline_mode<synchronous>, transform_indices = @transform_4, window_bounds = array<i64: 1, 128>}, {pipeline_mode = #tpu.pipeline_mode<synchronous>, transform_indices = @transform_5, window_bounds = array<i64: 2, 32, 32>}, {transform_indices = @transform_6, window_bounds = array<i64: 32, 128>}, {transform_indices = @transform_7, window_bounds = array<i64: 32, 128>}]} {
    %c0 = arith.constant 0 : index
    %c0_0 = arith.constant 0 : index
    %0 = vector.load %arg1[%c0, %c0_0] : memref<32x64xf32, #tpu.memory_space<vmem>>, vector<32x64xf32>
    %c0_1 = arith.constant 0 : index
    %c0_2 = arith.constant 0 : index
    %c0_3 = arith.constant 0 : index
    %1 = vector.load %arg6[%c0_1, %c0_2, %c0_3] : memref<2x32x32xf32, #tpu.memory_space<vmem>>, vector<1x32x32xf32>
    %2 = vector.shape_cast %1 : vector<1x32x32xf32> to vector<32x32xf32>
    %cst = arith.constant dense<0.000000e+00> : vector<32x64xf32>
    %3 = tpu.matmul %2, %0, %cst {dimension_numbers = #tpu.dot_dimension_numbers<[1], [0], [0], [1], [0, 0, 1, 1], [], []>} : vector<32x32xf32>, vector<32x64xf32>, vector<32x64xf32> -> vector<32x64xf32>
    %c1 = arith.constant 1 : index
    %c0_4 = arith.constant 0 : index
    %c0_5 = arith.constant 0 : index
    %4 = vector.load %arg6[%c1, %c0_4, %c0_5] : memref<2x32x32xf32, #tpu.memory_space<vmem>>, vector<1x32x32xf32>
    %5 = vector.shape_cast %4 : vector<1x32x32xf32> to vector<32x32xf32>
    %cst_6 = arith.constant dense<0.000000e+00> : vector<32x64xf32>
    %6 = tpu.matmul %5, %0, %cst_6 {dimension_numbers = #tpu.dot_dimension_numbers<[1], [0], [0], [1], [0, 0, 1, 1], [], []>} : vector<32x32xf32>, vector<32x64xf32>, vector<32x64xf32> -> vector<32x64xf32>
    %c0_7 = arith.constant 0 : index
    %c0_8 = arith.constant 0 : index
    %c0_9 = arith.constant 0 : index
    %7 = vector.load %arg2[%c0_7, %c0_8, %c0_9] : memref<3x64x128xf32, #tpu.memory_space<vmem>>, vector<1x64x128xf32>
    %8 = vector.shape_cast %7 : vector<1x64x128xf32> to vector<64x128xf32>
    %cst_10 = arith.constant dense<0.000000e+00> : vector<32x128xf32>
    %9 = tpu.matmul %3, %8, %cst_10 {dimension_numbers = #tpu.dot_dimension_numbers<[1], [0], [0], [1], [0, 0, 1, 1], [], []>} : vector<32x64xf32>, vector<64x128xf32>, vector<32x128xf32> -> vector<32x128xf32>
    %c1_11 = arith.constant 1 : index
    %c0_12 = arith.constant 0 : index
    %c0_13 = arith.constant 0 : index
    %10 = vector.load %arg2[%c1_11, %c0_12, %c0_13] : memref<3x64x128xf32, #tpu.memory_space<vmem>>, vector<1x64x128xf32>
    %11 = vector.shape_cast %10 : vector<1x64x128xf32> to vector<64x128xf32>
    %cst_14 = arith.constant dense<0.000000e+00> : vector<32x128xf32>
    %12 = tpu.matmul %0, %11, %cst_14 {dimension_numbers = #tpu.dot_dimension_numbers<[1], [0], [0], [1], [0, 0, 1, 1], [], []>} : vector<32x64xf32>, vector<64x128xf32>, vector<32x128xf32> -> vector<32x128xf32>
    %13 = arith.addf %9, %12 : vector<32x128xf32>
    %c2 = arith.constant 2 : index
    %c0_15 = arith.constant 0 : index
    %c0_16 = arith.constant 0 : index
    %14 = vector.load %arg2[%c2, %c0_15, %c0_16] : memref<3x64x128xf32, #tpu.memory_space<vmem>>, vector<1x64x128xf32>
    %15 = vector.shape_cast %14 : vector<1x64x128xf32> to vector<64x128xf32>
    %cst_17 = arith.constant dense<0.000000e+00> : vector<32x128xf32>
    %16 = tpu.matmul %6, %15, %cst_17 {dimension_numbers = #tpu.dot_dimension_numbers<[1], [0], [0], [1], [0, 0, 1, 1], [], []>} : vector<32x64xf32>, vector<64x128xf32>, vector<32x128xf32> -> vector<32x128xf32>
    %17 = arith.addf %13, %16 : vector<32x128xf32>
    %c0_18 = arith.constant 0 : index
    %c0_19 = arith.constant 0 : index
    %18 = vector.load %arg3[%c0_18, %c0_19] : memref<1x128xf32, #tpu.memory_space<vmem>>, vector<1x128xf32>
    %19 = vector.broadcast %18 : vector<1x128xf32> to vector<32x128xf32>
    %20 = arith.addf %17, %19 : vector<32x128xf32>
    %c0_20 = arith.constant 0 : index
    %c0_21 = arith.constant 0 : index
    %21 = vector.load %arg7[%c0_20, %c0_21] : memref<32x128xf32, #tpu.memory_space<vmem>>, vector<32x128xf32>
    tpu.vector_store %arg7[%c0_20, %c0_21], %20 {strides = array<i32>} : memref<32x128xf32, #tpu.memory_space<vmem>>, vector<32x128xf32>,
    %cst_22 = arith.constant 0.000000e+00 : f32
    %22 = vector.broadcast %cst_22 : f32 to vector<32x128xf32>
    %23 = arith.maximumf %20, %22 : vector<32x128xf32>
    %c0_23 = arith.constant 0 : index
    %c0_24 = arith.constant 0 : index
    %c0_25 = arith.constant 0 : index
    %24 = vector.load %arg6[%c0_23, %c0_24, %c0_25] : memref<2x32x32xf32, #tpu.memory_space<vmem>>, vector<1x32x32xf32>
    %25 = vector.shape_cast %24 : vector<1x32x32xf32> to vector<32x32xf32>
    %cst_26 = arith.constant dense<0.000000e+00> : vector<32x128xf32>
    %26 = tpu.matmul %25, %23, %cst_26 {dimension_numbers = #tpu.dot_dimension_numbers<[1], [0], [0], [1], [0, 0, 1, 1], [], []>} : vector<32x32xf32>, vector<32x128xf32>, vector<32x128xf32> -> vector<32x128xf32>
    %c1_27 = arith.constant 1 : index
    %c0_28 = arith.constant 0 : index
    %c0_29 = arith.constant 0 : index
    %27 = vector.load %arg6[%c1_27, %c0_28, %c0_29] : memref<2x32x32xf32, #tpu.memory_space<vmem>>, vector<1x32x32xf32>
    %28 = vector.shape_cast %27 : vector<1x32x32xf32> to vector<32x32xf32>
    %cst_30 = arith.constant dense<0.000000e+00> : vector<32x128xf32>
    %29 = tpu.matmul %28, %23, %cst_30 {dimension_numbers = #tpu.dot_dimension_numbers<[1], [0], [0], [1], [0, 0, 1, 1], [], []>} : vector<32x32xf32>, vector<32x128xf32>, vector<32x128xf32> -> vector<32x128xf32>
    %c0_31 = arith.constant 0 : index
    %c0_32 = arith.constant 0 : index
    %c0_33 = arith.constant 0 : index
    %30 = vector.load %arg4[%c0_31, %c0_32, %c0_33] : memref<3x128x128xf32, #tpu.memory_space<vmem>>, vector<1x128x128xf32>
    %31 = vector.shape_cast %30 : vector<1x128x128xf32> to vector<128x128xf32>
    %cst_34 = arith.constant dense<0.000000e+00> : vector<32x128xf32>
    %32 = tpu.matmul %26, %31, %cst_34 {dimension_numbers = #tpu.dot_dimension_numbers<[1], [0], [0], [1], [0, 0, 1, 1], [], []>} : vector<32x128xf32>, vector<128x128xf32>, vector<32x128xf32> -> vector<32x128xf32>
    %c1_35 = arith.constant 1 : index
    %c0_36 = arith.constant 0 : index
    %c0_37 = arith.constant 0 : index
    %33 = vector.load %arg4[%c1_35, %c0_36, %c0_37] : memref<3x128x128xf32, #tpu.memory_space<vmem>>, vector<1x128x128xf32>
    %34 = vector.shape_cast %33 : vector<1x128x128xf32> to vector<128x128xf32>
    %cst_38 = arith.constant dense<0.000000e+00> : vector<32x128xf32>
    %35 = tpu.matmul %23, %34, %cst_38 {dimension_numbers = #tpu.dot_dimension_numbers<[1], [0], [0], [1], [0, 0, 1, 1], [], []>} : vector<32x128xf32>, vector<128x128xf32>, vector<32x128xf32> -> vector<32x128xf32>
    %36 = arith.addf %32, %35 : vector<32x128xf32>
    %c2_39 = arith.constant 2 : index
    %c0_40 = arith.constant 0 : index
    %c0_41 = arith.constant 0 : index
    %37 = vector.load %arg4[%c2_39, %c0_40, %c0_41] : memref<3x128x128xf32, #tpu.memory_space<vmem>>, vector<1x128x128xf32>
    %38 = vector.shape_cast %37 : vector<1x128x128xf32> to vector<128x128xf32>
    %cst_42 = arith.constant dense<0.000000e+00> : vector<32x128xf32>
    %39 = tpu.matmul %29, %38, %cst_42 {dimension_numbers = #tpu.dot_dimension_numbers<[1], [0], [0], [1], [0, 0, 1, 1], [], []>} : vector<32x128xf32>, vector<128x128xf32>, vector<32x128xf32> -> vector<32x128xf32>
    %40 = arith.addf %36, %39 : vector<32x128xf32>
    %c0_43 = arith.constant 0 : index
    %c0_44 = arith.constant 0 : index
    %41 = vector.load %arg5[%c0_43, %c0_44] : memref<1x128xf32, #tpu.memory_space<vmem>>, vector<1x128xf32>
    %42 = vector.broadcast %41 : vector<1x128xf32> to vector<32x128xf32>
    %43 = arith.addf %40, %42 : vector<32x128xf32>
    %c0_45 = arith.constant 0 : index
    %c0_46 = arith.constant 0 : index
    %44 = vector.load %arg8[%c0_45, %c0_46] : memref<32x128xf32, #tpu.memory_space<vmem>>, vector<32x128xf32>
    tpu.vector_store %arg8[%c0_45, %c0_46], %43 {strides = array<i32>} : memref<32x128xf32, #tpu.memory_space<vmem>>, vector<32x128xf32>,
    return
  }
  func.func @transform_0(%arg0: i32) -> (i32, i32) {
    %c0_i32 = arith.constant 0 : i32
    %c0_i32_0 = arith.constant 0 : i32
    return %arg0, %c0_i32 : i32, i32
  }
  func.func @transform_1(%arg0: i32) -> (i32, i32, i32) {
    %c0_i32 = arith.constant 0 : i32
    %c0_i32_0 = arith.constant 0 : i32
    %c0_i32_1 = arith.constant 0 : i32
    %c0_i32_2 = arith.constant 0 : i32
    return %c0_i32, %c0_i32_0, %c0_i32_1 : i32, i32, i32
  }
  func.func @transform_2(%arg0: i32) -> (i32, i32) {
    %c0_i32 = arith.constant 0 : i32
    %c0_i32_0 = arith.constant 0 : i32
    %c0_i32_1 = arith.constant 0 : i32
    return %c0_i32, %c0_i32_0 : i32, i32
  }
  func.func @transform_3(%arg0: i32) -> (i32, i32, i32) {
    %c0_i32 = arith.constant 0 : i32
    %c0_i32_0 = arith.constant 0 : i32
    %c0_i32_1 = arith.constant 0 : i32
    %c0_i32_2 = arith.constant 0 : i32
    return %c0_i32, %c0_i32_0, %c0_i32_1 : i32, i32, i32
  }
  func.func @transform_4(%arg0: i32) -> (i32, i32) {
    %c0_i32 = arith.constant 0 : i32
    %c0_i32_0 = arith.constant 0 : i32
    %c0_i32_1 = arith.constant 0 : i32
    return %c0_i32, %c0_i32_0 : i32, i32
  }
  func.func @transform_5(%arg0: i32) -> (i32, i32, i32) {
    %c0_i32 = arith.constant 0 : i32
    %c0_i32_0 = arith.constant 0 : i32
    %c0_i32_1 = arith.constant 0 : i32
    %c0_i32_2 = arith.constant 0 : i32
    return %c0_i32, %c0_i32_0, %c0_i32_1 : i32, i32, i32
  }
  func.func @transform_6(%arg0: i32) -> (i32, i32) {
    %c0_i32 = arith.constant 0 : i32
    %c0_i32_0 = arith.constant 0 : i32
    return %arg0, %c0_i32 : i32, i32
  }
  func.func @transform_7(%arg0: i32) -> (i32, i32) {
    %c0_i32 = arith.constant 0 : i32
    %c0_i32_0 = arith.constant 0 : i32
    return %arg0, %c0_i32 : i32, i32
  }
}

</mosaic_0001>

<bundles_post_ra>
// kernel: tpu_custom_call.1
= control target key start
LH: loop header
LB: loop body
LE: loop exit
PB: predicated region body
PF: predicated region fallthrough
CT: control target
= control target key end

     0   :  { %13 = vsyncpa [#allocation3], 0  ;;  %s2158_s0 = inlined_call_operand.hbm [shape: f32[32,64], index: 0, kind: input, shape index: {}]   ;;  %s2159_s1 = inlined_call_operand.hbm [shape: f32[3,64,128], index: 1, kind: input, shape index: {}]   ;;  %s2160_s2 = inlined_call_operand.vmem [shape: f32[1,128], index: 2, kind: input, shape index: {}]   ;;  %s2161_s3 = inlined_call_operand.hbm [shape: f32[3,128,128], index: 3, kind: input, shape index: {}]   ;;  %s2162_s4 = inlined_call_operand.vmem [shape: f32[1,128], index: 4, kind: input, shape index: {}]   ;;  %s2163_s5 = inlined_call_operand.hbm [shape: f32[2,32,32], index: 5, kind: input, shape index: {}]   ;;  %s2164_s6 = inlined_call_operand.hbm [shape: f32[32,128], index: 6, kind: output, shape index: {0}]   ;;  %s2165_s7 = inlined_call_operand.hbm [shape: f32[32,128], index: 7, kind: output, shape index: {1}]  }
   0x1   :  { %14 = vsyncpa [#allocation6], 0 }
   0x2   :  { %15 = vsyncpa [#allocation9], 0 }
   0x3   :  { %16 = vsyncpa [#allocation4], 0 }
   0x4   :  { %17 = vsyncpa [#allocation12], 0  ;;  %s1928_s24 = smov [#allocation5]   ;;  %s1929_s26 = smov [#allocation2]  }
   0x5   :  { %s35_s25 = sshll.u32 %s1928_s24, 4  ;;  %s23_s27 = sshll.u32 %s1929_s26, 4  ;;  %s36_s25 = int_to_ptr.vmem [resolvable:$true] %s35_s25  ;;  %s1976_s27 = int_to_ptr.vmem [resolvable:$true] %s23_s27 }
   0x6   :  { %s1786_s30 = scalar_lea.hbm %s2159_s1, 3072 }
   0x7   :  { %p1787_p0 = scmp.ne.s32.totalorder %s2159_s1, %s1786_s30  ;;  %p1790_p1 = scmp.lt.u32.totalorder %s1786_s30, %s2159_s1 }
   0x9   :  { %p1792_p2 = pnand %p1790_p1, %p1787_p0 }
   0xb   :  { %1795 = shalt.err (!%p1792_p2)
}
   0xc   :  { %s1796_s12 = scalar_lea.vmem %s36_s25, 3072  ;;  %p1801_p4 = scmp.lt.s32.totalorder %s36_s25, %s36_s25 }
   0xd   :  { %p1797_p3 = scmp.ne.s32.totalorder %s36_s25, %s1796_s12  ;;  %p1802_p5 = scmp.lt.s32.totalorder %s1796_s12, %s1796_s12 }
   0xf   :  { %p1803_p6 = por %p1802_p5, %p1801_p4 }
  0x11   :  { %p1804_p7 = pnand %p1803_p6, %p1797_p3 }
  0x13   :  { %1807 = shalt.err (!%p1804_p7)
}
  0x14   :  { %s1930_s13 = smov 128   ;;  %s1931_s14 = smov 8  }
  0x15   :  { %41 = dma.hbm_to_vmem [thread:$0]  %s2159_s1, 3072, %s36_s25, [#allocation6], %s1930_s13, %s1930_s13, %s1931_s14  }
  0x16   :  { %s1808_s19 = scalar_lea.hbm %s2158_s0, 512 }
  0x17   :  { %p1809_p8 = scmp.ne.s32.totalorder %s2158_s0, %s1808_s19  ;;  %p1812_p9 = scmp.lt.u32.totalorder %s1808_s19, %s2158_s0 }
  0x19   :  { %p1814_p10 = pnand %p1812_p9, %p1809_p8 }
  0x1b   :  { %1817 = shalt.err (!%p1814_p10)
}
  0x1c   :  { %s1818_s24 = scalar_lea.vmem %s1976_s27, 512  ;;  %p1823_p12 = scmp.lt.s32.totalorder %s1976_s27, %s1976_s27 }
  0x1d   :  { %p1819_p11 = scmp.ne.s32.totalorder %s1976_s27, %s1818_s24  ;;  %p1824_p13 = scmp.lt.s32.totalorder %s1818_s24, %s1818_s24 }
  0x1f   :  { %p1825_p0 = por %p1824_p13, %p1823_p12 }
  0x21   :  { %p1826_p1 = pnand %p1825_p0, %p1819_p11 }
  0x23   :  { %1829 = shalt.err (!%p1826_p1)
}
  0x24   :  { %29 = dma.hbm_to_vmem [thread:$0]  %s2158_s0, 512, %s1976_s27, [#allocation3], %s1930_s13, %s1930_s13, %s1931_s14  }
  0x25   :  { %s1932_s26 = smov [#allocation7]   ;;  %s1933_s29 = smov [#allocation8]  }
  0x26   :  { %s49_s28 = sshll.u32 %s1932_s26, 4  ;;  %s63_s30 = sshll.u32 %s1933_s29, 4  ;;  %s50_s28 = int_to_ptr.vmem [resolvable:$true] %s49_s28  ;;  %s2013_s30 = int_to_ptr.vmem [resolvable:$true] %s63_s30 }
  0x27   :  { %s1830_s10 = scalar_lea.hbm %s2161_s3, 6144 }
  0x28   :  { %p1831_p2 = scmp.ne.s32.totalorder %s2161_s3, %s1830_s10  ;;  %p1834_p3 = scmp.lt.u32.totalorder %s1830_s10, %s2161_s3 }
  0x2a   :  { %p1836_p4 = pnand %p1834_p3, %p1831_p2 }
  0x2c   :  { %1839 = shalt.err (!%p1836_p4)
}
  0x2d   :  { %s1840_s0 = scalar_lea.vmem %s50_s28, 6144  ;;  %p1845_p6 = scmp.lt.s32.totalorder %s50_s28, %s50_s28 }
  0x2e   :  { %p1841_p5 = scmp.ne.s32.totalorder %s50_s28, %s1840_s0  ;;  %p1846_p7 = scmp.lt.s32.totalorder %s1840_s0, %s1840_s0 }
  0x30   :  { %p1847_p8 = por %p1846_p7, %p1845_p6 }
  0x32   :  { %p1848_p9 = pnand %p1847_p8, %p1841_p5 }
  0x34   :  { %1851 = shalt.err (!%p1848_p9)
}
  0x35   :  { %55 = dma.hbm_to_vmem [thread:$0]  %s2161_s3, 6144, %s50_s28, [#allocation6], %s1930_s13, %s1930_s13, %s1931_s14  }
  0x36   :  { %s1852_s20 = scalar_lea.hbm %s2163_s5, 1024 }
  0x37   :  { %p1853_p10 = scmp.ne.s32.totalorder %s2163_s5, %s1852_s20  ;;  %p1856_p11 = scmp.lt.u32.totalorder %s1852_s20, %s2163_s5 }
  0x39   :  { %p1858_p12 = pnand %p1856_p11, %p1853_p10 }
  0x3b   :  { %1861 = shalt.err (!%p1858_p12)
}
  0x3c   :  { %s1862_s1 = scalar_lea.vmem %s2013_s30, 1024  ;;  %p1867_p0 = scmp.lt.s32.totalorder %s2013_s30, %s2013_s30 }
  0x3d   :  { %p1863_p13 = scmp.ne.s32.totalorder %s2013_s30, %s1862_s1  ;;  %p1868_p1 = scmp.lt.s32.totalorder %s1862_s1, %s1862_s1 }
  0x3f   :  { %p1869_p2 = por %p1868_p1, %p1867_p0 }
  0x41   :  { %p1870_p3 = pnand %p1869_p2, %p1863_p13 }
  0x43   :  { %1873 = shalt.err (!%p1870_p3)
}
  0x44   :  { %69 = dma.hbm_to_vmem [thread:$0]  %s2163_s5, 1024, %s2013_s30, [#allocation9], %s1930_s13, %s1930_s13, %s1931_s14  }
  0x45   :  { %1918 = dma.done.wait [#allocation3], 512  }
  0x46   :  { %1919 = vsyncadd [#allocation3], 4294966784 }
  0x47   :  { %1920 = dma.done.wait [#allocation6], 9216  }
  0x48   :  { %1921 = vsyncadd [#allocation6], 4294958080 }
  0x49   :  { %1922 = dma.done.wait [#allocation9], 1024  }
  0x4a   :  { %1923 = vsyncadd [#allocation9], 4294966272  ;;  %vm90_vm0 = vcmask 261120   ;;  %v82_v0 = vld [vmem:[#allocation2] sm:$0xff]  ;;  %v83_v1 = vld [vmem:[#allocation2 + $0x8] sm:$0xff]  ;;  %vm307_vm1 = vcmask 523264  }
  0x4b   :  { %v84_v2 = vld [vmem:[#allocation2 + $0x10] sm:$0xff]  ;;  %v1586_v3 = vpack.c.bf16 %v83_v1, %v82_v0  ;;  %v2050_v4 = vld [vmem:[#allocation2 + $0x18] sm:$0xff]  ;;  %v86_v5 = vld [vmem:[#allocation8] sm:$0xff] }
  0x4c   :  { %v1590_v6 = vpack.c.bf16 %v2050_v4, %v84_v2  ;;  %1358 = vmatprep.mubr.msk.f32.mxu0 %vm90_vm0, %v86_v5  ;;  %v2054_v7 = vld [vmem:[#allocation8 + $0x20] sm:$0xff]  ;;  %v300_v9 = vld [vmem:[#allocation5 + $0x48] sm:$0xff]  ;;  %v301_v11 = vld [vmem:[#allocation5 + $0x50] sm:$0xff] }
  0x4d   :  { %1587 = vmatprep.subr.bf16.mxu0 %v1586_v3  ;;  %1595 = vmatprep.subr.bf16.mxu1 %v1586_v3  ;;  %v299_v8 = vld [vmem:[#allocation5 + $0x40] sm:$0xff]  ;;  %v302_v12 = vld [vmem:[#allocation5 + $0x58] sm:$0xff]  ;;  %v2058_v13 = vld [vmem:[#allocation8 + $0x8] sm:$0xff] }
  0x4e   :  { %1589 = vmatpush3.bf16.msra.mxu0 %v1586_v3  ;;  %1597 = vmatpush3.bf16.msra.mxu1 %v1586_v3  ;;  %v1602_v10 = vpack.c.bf16 %v300_v9, %v299_v8  ;;  %v2060_v14 = vld [vmem:[#allocation8 + $0x28] sm:$0xff]  ;;  %v2062_v15 = vld [vmem:[#allocation8 + $0x10] sm:$0xff]  ;;  %v1606_v17 = vpack.c.bf16 %v302_v12, %v301_v11  ;;  %v303_v18 = vld [vmem:[#allocation5 + $0x60] sm:$0xff] }
  0x4f   :  { %1591 = vmatprep.subr.bf16.mxu0 %v1590_v6  ;;  %1599 = vmatprep.subr.bf16.mxu1 %v1590_v6  ;;  %v2064_v16 = vld [vmem:[#allocation8 + $0x30] sm:$0xff]  ;;  %v304_v19 = vld [vmem:[#allocation5 + $0x68] sm:$0xff]  ;;  %v2072_v20 = vld [vmem:[#allocation8 + $0x18] sm:$0xff] }
  0x50   :  { %1372 = vmatprep.mubr.msk.f32.mxu1 %vm90_vm0, %v2054_v7  ;;  %v2076_v21 = vld [vmem:[#allocation8 + $0x38] sm:$0xff]  ;;  %v1610_v22 = vpack.c.bf16 %v304_v19, %v303_v18  ;;  %v305_v23 = vld [vmem:[#allocation5 + $0x70] sm:$0xff]  ;;  %v290_v26 = vld [vmem:[#allocation5] sm:$0xff] }
  0x51   :  { %v306_v24 = vld [vmem:[#allocation5 + $0x78] sm:$0xff]  ;;  %v291_v27 = vld [vmem:[#allocation5 + $0x8] sm:$0xff]  ;;  %v292_v29 = vld [vmem:[#allocation5 + $0x10] sm:$0xff] }
  0x52   :  { %1593 = vmatpush3.bf16.msra.mxu0 %v1590_v6  ;;  %1601 = vmatpush3.bf16.msra.mxu1 %v1590_v6  ;;  %v1614_v25 = vpack.c.bf16 %v306_v24, %v305_v23  ;;  %v1618_v28 = vpack.c.bf16 %v291_v27, %v290_v26  ;;  %v293_v30 = vld [vmem:[#allocation5 + $0x18] sm:$0xff]  ;;  %v294_v32 = vld [vmem:[#allocation5 + $0x20] sm:$0xff]  ;;  %v295_v33 = vld [vmem:[#allocation5 + $0x28] sm:$0xff] }
  0x53   :  { %1603 = vmatprep.subr.bf16.mxu0 %v1602_v10  ;;  %v1622_v31 = vpack.c.bf16 %v293_v30, %v292_v29  ;;  %v1626_v34 = vpack.c.bf16 %v295_v33, %v294_v32  ;;  %v296_v35 = vld [vmem:[#allocation5 + $0x30] sm:$0xff]  ;;  %v297_v36 = vld [vmem:[#allocation5 + $0x38] sm:$0xff]  ;;  %v503_v38 = vld [vmem:[#allocation5 + $0x80] sm:$0xff] }
  0x54   :  { %v1630_v37 = vpack.c.bf16 %v297_v36, %v296_v35  ;;  %v504_v39 = vld [vmem:[#allocation5 + $0x88] sm:$0xff]  ;;  %v505_v41 = vld [vmem:[#allocation5 + $0x90] sm:$0xff]  ;;  %v506_v42 = vld [vmem:[#allocation5 + $0x98] sm:$0xff] }
  0x55   :  { %1359 = vmatmul.mubr.msk.f32.vlgmr.msra.gmra.mrb[0].mxu0 %vm90_vm0, %v2058_v13  ;;  %1373 = vmatmul.mubr.msk.f32.vlgmr.msra.gmra.mrb[0].mxu1 %vm90_vm0, %v2060_v14  ;;  %v1634_v40 = vpack.c.bf16 %v504_v39, %v503_v38  ;;  %v1638_v46 = vpack.c.bf16 %v506_v42, %v505_v41  ;;  %v507_v48 = vld [vmem:[#allocation5 + $0xa0] sm:$0xff]  ;;  %v508_v49 = vld [vmem:[#allocation5 + $0xa8] sm:$0xff]  ;;  %v509_v55 = vld [vmem:[#allocation5 + $0xb0] sm:$0xff] }
  0x56   :  { %1361 = vmatprep.mubr.msk.f32.mxu0 %vm90_vm0, %v2062_v15  ;;  %1375 = vmatprep.mubr.msk.f32.mxu1 %vm90_vm0, %v2064_v16  ;;  %v1642_v53 = vpack.c.bf16 %v508_v49, %v507_v48  ;;  %v510_v56 = vld [vmem:[#allocation5 + $0xb8] sm:$0xff]  ;;  %v850_v58 = vld [vmem:[#allocation7 + $0x80] sm:$0xff]  ;;  %v851_v59 = vld [vmem:[#allocation7 + $0x88] sm:$0xff] }
  0x57   :  { %1605 = vmatpush3.bf16.msra.mxu0 %v1602_v10  ;;  %v1646_v57 = vpack.c.bf16 %v510_v56, %v509_v55  ;;  %v1666_v60 = vpack.c.bf16 %v851_v59, %v850_v58  ;;  %v852_v61 = vld [vmem:[#allocation7 + $0x90] sm:$0xff]  ;;  %v853_v62 = vld [vmem:[#allocation7 + $0x98] sm:$0xff]  ;;  %v858_v6 = vld [vmem:[#allocation7 + $0xc0] sm:$0xff] }
  0x58   :  { %1607 = vmatprep.subr.bf16.mxu0 %v1606_v17  ;;  %v1670_v63 = vpack.c.bf16 %v853_v62, %v852_v61  ;;  %v856_v3 = vld [vmem:[#allocation7 + $0xb0] sm:$0xff]  ;;  %v859_v8 = vld [vmem:[#allocation7 + $0xc8] sm:$0xff]  ;;  %v861_v11 = vld [vmem:[#allocation7 + $0xd8] sm:$0xff] }
  0x59   :  { %1362 = vmatmul.mubr.msk.f32.gmra.mrb[2].mxu0 %vm90_vm0, %v2072_v20  ;;  %1376 = vmatmul.mubr.msk.f32.gmra.mrb[2].mxu1 %vm90_vm0, %v2076_v21  ;;  %v1682_v9 = vpack.c.bf16 %v859_v8, %v858_v6  ;;  %v860_v10 = vld [vmem:[#allocation7 + $0xd0] sm:$0xff]  ;;  %v863_v18 = vld [vmem:[#allocation7 + $0xe8] sm:$0xff]  ;;  %v865_v23 = vld [vmem:[#allocation7 + $0xf8] sm:$0xff] }
  0x5a   :  { %1394 = vmatprep.mubr.msk.f32.mxu0 %vm307_vm1, %v82_v0  ;;  %1452 = vmatprep.mubr.msk.f32.mxu1 %vm90_vm0, %v86_v5  ;;  %v854_v0 = vld [vmem:[#allocation7 + $0xa0] sm:$0xff]  ;;  %v1686_v12 = vpack.c.bf16 %v861_v11, %v860_v10  ;;  %v834_v41 = vld [vmem:[#allocation7 + $0x8] sm:$0xff]  ;;  %v840_v48 = vld [vmem:[#allocation7 + $0x38] sm:$0xff] }
  0x5b   :  { %1609 = vmatpush3.bf16.msra.mxu0 %v1606_v17  ;;  %v862_v17 = vld [vmem:[#allocation7 + $0xe0] sm:$0xff]  ;;  %v842_v49 = vld [vmem:[#allocation7 + $0x48] sm:$0xff]  ;;  %v848_v55 = vld [vmem:[#allocation7 + $0x78] sm:$0xff] }
  0x5c   :  { %1611 = vmatprep.subr.bf16.mxu0 %v1610_v22  ;;  %v1690_v19 = vpack.c.bf16 %v863_v18, %v862_v17  ;;  %v1038_v58 = vld [vmem:[#allocation7 + $0x108] sm:$0xff]  ;;  %v1043_v11 = vld [vmem:[#allocation7 + $0x130] sm:$0xff] }
  0x5d   :  { %v1042_v6 = vld [vmem:[#allocation7 + $0x128] sm:$0xff] }
  0x5f   :  { %1613 = vmatpush3.bf16.msra.mxu0 %v1610_v22  ;;  %v864_v22 = vld [vmem:[#allocation7 + $0xf0] sm:$0xff] }
  0x60   :  { %1615 = vmatprep.subr.bf16.mxu0 %v1614_v25  ;;  %v1694_v24 = vpack.c.bf16 %v865_v23, %v864_v22  ;;  %v1045_v22 = vld [vmem:[#allocation7 + $0x140] sm:$0xff]  ;;  %v1046_v23 = vld [vmem:[#allocation7 + $0x148] sm:$0xff] }
  0x63   :  { %1617 = vmatpush3.bf16.msra.mxu0 %v1614_v25  ;;  %v1212_v25 = vld [vmem:[%s2160_s2] ss:$0 sm:$0xff]  ;;  %s1934_s2 = smov [#allocation10]  }
  0x64   :  { %1619 = vmatprep.subr.bf16.mxu0 %v1618_v28  ;;  %s1162_s28 = sshll.u32 %s1934_s2, 4  ;;  %s1163_s28 = int_to_ptr.vmem [resolvable:$true] %s1162_s28 }
  0x65   :  { %s1874_s29 = scalar_lea.vmem %s1163_s28, 512  ;;  %p1879_p5 = scmp.lt.s32.totalorder %s1163_s28, %s1163_s28 }
  0x66   :  { %1395 = vmatmul.mubr.msk.f32.vlgmr.msra.gmra.mrb[4].mxu0 %vm307_vm1, %v83_v1  ;;  %v855_v1 = vld [vmem:[#allocation7 + $0xa8] sm:$0xff]  ;;  %p1875_p4 = scmp.ne.s32.totalorder %s1163_s28, %s1874_s29  ;;  %p1880_p6 = scmp.lt.s32.totalorder %s1874_s29, %s1874_s29 }
  0x67   :  { %1621 = vmatpush3.bf16.msra.mxu0 %v1618_v28  ;;  %1397 = vmatprep.mubr.msk.f32.mxu0 %vm307_vm1, %v84_v2  ;;  %v1674_v2 = vpack.c.bf16 %v855_v1, %v854_v0  ;;  %v1039_v0 = vld [vmem:[#allocation7 + $0x110] sm:$0xff]  ;;  %v1040_v1 = vld [vmem:[#allocation7 + $0x118] sm:$0xff] }
  0x68   :  { %1623 = vmatprep.subr.bf16.mxu0 %v1622_v31  ;;  %p1881_p7 = por %p1880_p6, %p1879_p5 }
  0x6a   :  { %1398 = vmatmul.mubr.msk.f32.gmra.mrb[6].mxu0 %vm307_vm1, %v2050_v4  ;;  %v857_v4 = vld [vmem:[#allocation7 + $0xb8] sm:$0xff]  ;;  %p1882_p8 = pnand %p1881_p7, %p1875_p4 }
  0x6b   :  { %1625 = vmatpush3.bf16.msra.mxu0 %v1622_v31  ;;  %v1678_v5 = vpack.c.bf16 %v857_v4, %v856_v3  ;;  %v1734_v4 = vpack.c.bf16 %v1040_v1, %v1039_v0 }
  0x6c   :  { %1627 = vmatprep.subr.bf16.mxu0 %v1626_v34 }
  0x6f   :  { %1629 = vmatpush3.bf16.msra.mxu0 %v1626_v34 }
  0x70   :  { %1631 = vmatprep.subr.bf16.mxu0 %v1630_v37 }
  0x73   :  { %1633 = vmatpush3.bf16.msra.mxu0 %v1630_v37 }
  0x74   :  { %1635 = vmatprep.subr.bf16.mxu0 %v1634_v40 }
 0x128   :  { %v1360_v43 = vpop.f32.mrb[0].mxu0  ;;  %v1374_v44 = vpop.f32.mrb[0].mxu1 }
 0x129   :  { %v169_v45 = vpop.f32.mrb[1].mxu0  ;;  %v271_v47 = vpop.f32.mrb[1].mxu1 }
 0x12a   :  { %1416 = vmatprep.mubr.msk.f32.mxu0 %vm307_vm1, %v169_v45 }
 0x12b   :  { %1417 = vmatmul.mubr.msk.f32.vlgmr.msra.gmra.mrb[4].mxu0 %vm307_vm1, %v1360_v43  ;;  %v835_v43 = vld [vmem:[#allocation7 + $0x10] sm:$0xff] }
 0x12c   :  { %1637 = vmatpush3.bf16.msra.mxu0 %v1634_v40  ;;  %v1363_v50 = vpop.f32.mrb[2].mxu0  ;;  %v1377_v51 = vpop.f32.mrb[2].mxu1  ;;  %v833_v40 = vld [vmem:[#allocation7] sm:$0xff] }
 0x12d   :  { %1639 = vmatprep.subr.bf16.mxu0 %v1638_v46  ;;  %v179_v52 = vpop.f32.mrb[3].mxu0  ;;  %v281_v54 = vpop.f32.mrb[3].mxu1  ;;  %v1698_v42 = vpack.c.bf16 %v834_v41, %v833_v40 }
 0x12e   :  { %1419 = vmatprep.mubr.msk.f32.mxu0 %vm307_vm1, %v179_v52  ;;  %v845_v52 = vld [vmem:[#allocation7 + $0x60] sm:$0xff] }
 0x12f   :  { %1420 = vmatmul.mubr.msk.f32.gmra.mrb[6].mxu0 %vm307_vm1, %v1363_v50 }
 0x130   :  { %1641 = vmatpush3.bf16.msra.mxu0 %v1638_v46  ;;  %1438 = vmatprep.mubr.msk.f32.mxu0 %vm307_vm1, %v271_v47  ;;  %v837_v46 = vld [vmem:[#allocation7 + $0x20] sm:$0xff]  ;;  %v838_v47 = vld [vmem:[#allocation7 + $0x28] sm:$0xff] }
 0x131   :  { %1643 = vmatprep.subr.bf16.mxu0 %v1642_v53 }
 0x134   :  { %1645 = vmatpush3.bf16.msra.mxu0 %v1642_v53  ;;  %v846_v53 = vld [vmem:[#allocation7 + $0x68] sm:$0xff] }
 0x135   :  { %1647 = vmatprep.subr.bf16.mxu0 %v1646_v57 }
 0x138   :  { %1649 = vmatpush3.bf16.msra.mxu0 %v1646_v57  ;;  %v1037_v57 = vld [vmem:[#allocation7 + $0x100] sm:$0xff] }
 0x139   :  { %1667 = vmatprep.subr.bf16.mxu0 %v1666_v60  ;;  %v1730_v59 = vpack.c.bf16 %v1038_v58, %v1037_v57 }
 0x13b   :  { %1439 = vmatmul.mubr.msk.f32.vlgmr.msra.gmra.mrb[4].mxu0 %vm307_vm1, %v1374_v44  ;;  %v836_v44 = vld [vmem:[#allocation7 + $0x18] sm:$0xff] }
 0x13c   :  { %1441 = vmatprep.mubr.msk.f32.mxu0 %vm307_vm1, %v281_v54  ;;  %1669 = vmatpush3.bf16.msra.mxu0 %v1666_v60  ;;  %v1702_v45 = vpack.c.bf16 %v836_v44, %v835_v43  ;;  %v1722_v54 = vpack.c.bf16 %v846_v53, %v845_v52 }
 0x13d   :  { %1671 = vmatprep.subr.bf16.mxu0 %v1670_v63 }
 0x13f   :  { %1442 = vmatmul.mubr.msk.f32.gmra.mrb[6].mxu0 %vm307_vm1, %v1377_v51  ;;  %v844_v51 = vld [vmem:[#allocation7 + $0x58] sm:$0xff] }
 0x140   :  { %1673 = vmatpush3.bf16.msra.mxu0 %v1670_v63 }
 0x141   :  { %1675 = vmatprep.subr.bf16.mxu0 %v1674_v2 }
 0x144   :  { %1677 = vmatpush3.bf16.msra.mxu0 %v1674_v2 }
 0x145   :  { %1679 = vmatprep.subr.bf16.mxu0 %v1678_v5 }
 0x148   :  { %1681 = vmatpush3.bf16.msra.mxu0 %v1678_v5  ;;  %v1041_v5 = vld [vmem:[#allocation7 + $0x120] sm:$0xff] }
 0x149   :  { %1683 = vmatprep.subr.bf16.mxu0 %v1682_v9 }
 0x14c   :  { %1685 = vmatpush3.bf16.msra.mxu0 %v1682_v9  ;;  %v1738_v9 = vpack.c.bf16 %v1042_v6, %v1041_v5 }
 0x14d   :  { %1687 = vmatprep.subr.bf16.mxu0 %v1686_v12 }
 0x150   :  { %1689 = vmatpush3.bf16.msra.mxu0 %v1686_v12  ;;  %v1044_v12 = vld [vmem:[#allocation7 + $0x138] sm:$0xff] }
 0x151   :  { %1691 = vmatprep.subr.bf16.mxu0 %v1690_v19  ;;  %v1742_v18 = vpack.c.bf16 %v1044_v12, %v1043_v11 }
 0x154   :  { %1693 = vmatpush3.bf16.msra.mxu0 %v1690_v19 }
 0x155   :  { %1695 = vmatprep.subr.bf16.mxu0 %v1694_v24 }
 0x158   :  { %1697 = vmatpush3.bf16.msra.mxu0 %v1694_v24 }
 0x20e   :  { %v1440_v26 = vpop.f32.mrb[4].mxu0 }
 0x20f   :  { %v620_v27 = vadd.f32 %v1440_v26, %v1212_v25  ;;  %v589_v28 = vpop.f32.mrb[5].mxu0 }
 0x210   :  { %v619_v29 = vadd.f32 %v1212_v25, %v589_v28  ;;  %v1048_v28 = vld [vmem:[#allocation7 + $0x158] sm:$0xff] }
 0x211   :  { %624 = vst [vmem:[#allocation10 + $0x8] sm:$0xff] %v620_v27  ;;  %v628_v30 = vmax.f32 %v620_v27, 0.0  ;;  %v1047_v27 = vld [vmem:[#allocation7 + $0x150] sm:$0xff] }
 0x212   :  { %623 = vst [vmem:[#allocation10] sm:$0xff] %v619_v29  ;;  %v627_v31 = vmax.f32 %v619_v29, 0.0  ;;  %v1443_v32 = vpop.f32.mrb[6].mxu0  ;;  %v1750_v29 = vpack.c.bf16 %v1048_v28, %v1047_v27 }
 0x213   :  { %v622_v33 = vadd.f32 %v1443_v32, %v1212_v25  ;;  %v599_v34 = vpop.f32.mrb[7].mxu0 }
 0x214   :  { %v1650_v35 = vpack.c.bf16 %v628_v30, %v627_v31  ;;  %v621_v36 = vadd.f32 %v1212_v25, %v599_v34  ;;  %1504 = vmatprep.mubr.f32.mxu0 %v627_v31  ;;  %v1746_v25 = vpack.c.bf16 %v1046_v23, %v1045_v22  ;;  %v1050_v31 = vld [vmem:[#allocation7 + $0x168] sm:$0xff]  ;;  %v1052_v34 = vld [vmem:[#allocation7 + $0x178] sm:$0xff] }
 0x215   :  { %626 = vst [vmem:[#allocation10 + $0x18] sm:$0xff] %v622_v33  ;;  %v630_v37 = vmax.f32 %v622_v33, 0.0  ;;  %1505 = vmatmul.mubr.f32.vlgmr.msra.gmra.mrb[8].mxu0 %v628_v30  ;;  %v1049_v30 = vld [vmem:[#allocation7 + $0x160] sm:$0xff]  ;;  %v1051_v33 = vld [vmem:[#allocation7 + $0x170] sm:$0xff] }
 0x216   :  { %625 = vst [vmem:[#allocation10 + $0x10] sm:$0xff] %v621_v36  ;;  %v629_v38 = vmax.f32 %v621_v36, 0.0  ;;  %1651 = vmatprep.subr.bf16.mxu1 %v1650_v35  ;;  %v1754_v32 = vpack.c.bf16 %v1050_v31, %v1049_v30 }
 0x217   :  { %1653 = vmatpush3.bf16.msra.mxu1 %v1650_v35 }
 0x218   :  { %v1654_v39 = vpack.c.bf16 %v630_v37, %v629_v38  ;;  %1507 = vmatprep.mubr.f32.mxu0 %v629_v38 }
 0x219   :  { %1508 = vmatmul.mubr.f32.gmra.mrb[10].mxu0 %v630_v37 }
 0x21a   :  { %1655 = vmatprep.subr.bf16.mxu1 %v1654_v39 }
 0x21b   :  { %1657 = vmatpush3.bf16.msra.mxu1 %v1654_v39 }
 0x21c   :  { %1659 = vmatprep.subr.bf16.mxu1 %v1650_v35 }
 0x21e   :  { %1453 = vmatmul.mubr.msk.f32.vlgmr.msra.gmra.mrb[4].mxu1 %vm90_vm0, %v2058_v13  ;;  %v1706_v13 = vpack.c.bf16 %v838_v47, %v837_v46 }
 0x21f   :  { %1661 = vmatpush3.bf16.msra.mxu1 %v1650_v35  ;;  %1455 = vmatprep.mubr.msk.f32.mxu1 %vm90_vm0, %v2062_v15  ;;  %v839_v15 = vld [vmem:[#allocation7 + $0x30] sm:$0xff]  ;;  %v1758_v35 = vpack.c.bf16 %v1052_v34, %v1051_v33 }
 0x220   :  { %1663 = vmatprep.subr.bf16.mxu1 %v1654_v39 }
 0x222   :  { %1456 = vmatmul.mubr.msk.f32.gmra.mrb[6].mxu1 %vm90_vm0, %v2072_v20  ;;  %v841_v20 = vld [vmem:[#allocation7 + $0x40] sm:$0xff] }
 0x223   :  { %1665 = vmatpush3.bf16.msra.mxu1 %v1654_v39  ;;  %1466 = vmatprep.mubr.msk.f32.mxu1 %vm90_vm0, %v2054_v7  ;;  %v1710_v7 = vpack.c.bf16 %v840_v48, %v839_v15  ;;  %v1714_v50 = vpack.c.bf16 %v842_v49, %v841_v20 }
 0x224   :  { %1699 = vmatprep.subr.bf16.mxu1 %v1698_v42 }
 0x226   :  { %1467 = vmatmul.mubr.msk.f32.vlgmr.msra.gmra.mrb[8].mxu1 %vm90_vm0, %v2060_v14  ;;  %v843_v14 = vld [vmem:[#allocation7 + $0x50] sm:$0xff] }
 0x227   :  { %1469 = vmatprep.mubr.msk.f32.mxu1 %vm90_vm0, %v2064_v16  ;;  %1701 = vmatpush3.bf16.msra.mxu1 %v1698_v42  ;;  %v1718_v16 = vpack.c.bf16 %v844_v51, %v843_v14 }
 0x228   :  { %1703 = vmatprep.subr.bf16.mxu1 %v1702_v45 }
 0x22a   :  { %1470 = vmatmul.mubr.msk.f32.gmra.mrb[10].mxu1 %vm90_vm0, %v2076_v21  ;;  %v847_v21 = vld [vmem:[#allocation7 + $0x70] sm:$0xff] }
 0x22b   :  { %1705 = vmatpush3.bf16.msra.mxu1 %v1702_v45  ;;  %v1726_v56 = vpack.c.bf16 %v848_v55, %v847_v21 }
 0x22c   :  { %1707 = vmatprep.subr.bf16.mxu1 %v1706_v13 }
 0x22f   :  { %1709 = vmatpush3.bf16.msra.mxu1 %v1706_v13 }
 0x230   :  { %1711 = vmatprep.subr.bf16.mxu1 %v1710_v7 }
 0x233   :  { %1713 = vmatpush3.bf16.msra.mxu1 %v1710_v7 }
 0x234   :  { %1715 = vmatprep.subr.bf16.mxu1 %v1714_v50 }
 0x237   :  { %1717 = vmatpush3.bf16.msra.mxu1 %v1714_v50 }
 0x238   :  { %1719 = vmatprep.subr.bf16.mxu1 %v1718_v16 }
 0x23b   :  { %1721 = vmatpush3.bf16.msra.mxu1 %v1718_v16 }
 0x23c   :  { %1723 = vmatprep.subr.bf16.mxu1 %v1722_v54 }
 0x23f   :  { %1725 = vmatpush3.bf16.msra.mxu1 %v1722_v54 }
 0x240   :  { %1727 = vmatprep.subr.bf16.mxu1 %v1726_v56 }
 0x243   :  { %1729 = vmatpush3.bf16.msra.mxu1 %v1726_v56 }
 0x244   :  { %1731 = vmatprep.subr.bf16.mxu1 %v1730_v59 }
 0x2e8   :  { %v2113_v60 = vpop.f32.mrb[8].mxu0 }
 0x2e9   :  { %v2115_v61 = vpop.f32.mrb[9].mxu0 }
 0x2ec   :  { %v2117_v62 = vpop.f32.mrb[10].mxu0 }
 0x2ed   :  { %v2119_v63 = vpop.f32.mrb[11].mxu0 }
 0x2f1   :  { %v1454_v2 = vpop.f32.mrb[4].mxu1 }
 0x2f2   :  { %v713_v3 = vpop.f32.mrb[5].mxu1 }
 0x2f3   :  { %1542 = vmatprep.mubr.f32.mxu1 %v713_v3 }
 0x2f4   :  { %1543 = vmatmul.mubr.f32.vlgmr.msra.gmra.mrb[12].mxu1 %v1454_v2 }
 0x2f5   :  { %1733 = vmatpush3.bf16.msra.mxu1 %v1730_v59  ;;  %v1457_v8 = vpop.f32.mrb[6].mxu1 }
 0x2f6   :  { %1735 = vmatprep.subr.bf16.mxu1 %v1734_v4  ;;  %v723_v10 = vpop.f32.mrb[7].mxu1 }
 0x2f7   :  { %1545 = vmatprep.mubr.f32.mxu1 %v723_v10 }
 0x2f8   :  { %1546 = vmatmul.mubr.f32.gmra.mrb[14].mxu1 %v1457_v8 }
 0x2f9   :  { %1737 = vmatpush3.bf16.msra.mxu1 %v1734_v4  ;;  %v1468_v17 = vpop.f32.mrb[8].mxu1 }
 0x2fa   :  { %1739 = vmatprep.subr.bf16.mxu1 %v1738_v9  ;;  %v814_v19 = vpop.f32.mrb[9].mxu1 }
 0x2fb   :  { %1580 = vmatprep.mubr.f32.mxu1 %v814_v19 }
 0x2fd   :  { %1741 = vmatpush3.bf16.msra.mxu1 %v1738_v9  ;;  %v1471_v24 = vpop.f32.mrb[10].mxu1 }
 0x2fe   :  { %1743 = vmatprep.subr.bf16.mxu1 %v1742_v18  ;;  %v824_v26 = vpop.f32.mrb[11].mxu1 }
 0x301   :  { %1745 = vmatpush3.bf16.msra.mxu1 %v1742_v18 }
 0x302   :  { %1747 = vmatprep.subr.bf16.mxu1 %v1746_v25 }
 0x305   :  { %1749 = vmatpush3.bf16.msra.mxu1 %v1746_v25 }
 0x306   :  { %1751 = vmatprep.subr.bf16.mxu1 %v1750_v29 }
 0x309   :  { %1753 = vmatpush3.bf16.msra.mxu1 %v1750_v29 }
 0x30a   :  { %1755 = vmatprep.subr.bf16.mxu1 %v1754_v32 }
 0x30d   :  { %1757 = vmatpush3.bf16.msra.mxu1 %v1754_v32 }
 0x30e   :  { %1759 = vmatprep.subr.bf16.mxu1 %v1758_v35 }
 0x311   :  { %1761 = vmatpush3.bf16.msra.mxu1 %v1758_v35 }
 0x314   :  { %1581 = vmatmul.mubr.f32.vlgmr.msra.gmra.mrb[12].mxu1 %v1468_v17 }
 0x315   :  { %1583 = vmatprep.mubr.f32.mxu1 %v824_v26 }
 0x318   :  { %1584 = vmatmul.mubr.f32.gmra.mrb[14].mxu1 %v1471_v24 }
 0x319   :  { %1885 = shalt.err (!%p1882_p8)
}
 0x31a   :  { %s1886_s9 = scalar_lea.hbm %s2164_s6, 512 }
 0x31b   :  { %p1887_p9 = scmp.ne.s32.totalorder %s2164_s6, %s1886_s9  ;;  %p1890_p10 = scmp.lt.u32.totalorder %s1886_s9, %s2164_s6 }
 0x31d   :  { %p1892_p11 = pnand %p1890_p10, %p1887_p9 }
 0x31f   :  { %1895 = shalt.err (!%p1892_p11)
}
 0x320   :  { %1168 = dma.vmem_to_hbm [thread:$0]  %s1163_s28, 512, %s2164_s6, [#allocation4], %s1930_s13, %s1930_s13, %s1931_s14  }
 0x321   :  { %v1221_v37 = vld [vmem:[%s2162_s4] ss:$0 sm:$0xff]  ;;  %s1935_s18 = smov [#allocation11]  }
 0x322   :  { %s1174_s19 = sshll.u32 %s1935_s18, 4  ;;  %s1175_s19 = int_to_ptr.vmem [resolvable:$true] %s1174_s19 }
 0x323   :  { %s1896_s4 = scalar_lea.vmem %s1175_s19, 512  ;;  %p1901_p13 = scmp.lt.s32.totalorder %s1175_s19, %s1175_s19 }
 0x324   :  { %p1897_p12 = scmp.ne.s32.totalorder %s1175_s19, %s1896_s4  ;;  %p1902_p0 = scmp.lt.s32.totalorder %s1896_s4, %s1896_s4 }
 0x326   :  { %p1903_p1 = por %p1902_p0, %p1901_p13 }
 0x328   :  { %p1904_p2 = pnand %p1903_p1, %p1897_p12 }
 0x3e7   :  { %v1582_v36 = vpop.f32.mrb[12].mxu1 }
 0x3e8   :  { %v1762_v38 = vadd.f32 %v1582_v36, %v2113_v60  ;;  %v1119_v39 = vpop.f32.mrb[13].mxu1 }
 0x3e9   :  { %v1763_v40 = vadd.f32 %v1119_v39, %v2115_v61 }
 0x3ea   :  { %v1150_v41 = vadd.f32 %v1762_v38, %v1221_v37 }
 0x3eb   :  { %v1149_v42 = vadd.f32 %v1763_v40, %v1221_v37  ;;  %v1585_v43 = vpop.f32.mrb[14].mxu1 }
 0x3ec   :  { %1154 = vst [vmem:[#allocation11 + $0x8] sm:$0xff] %v1150_v41  ;;  %v1764_v44 = vadd.f32 %v1585_v43, %v2117_v62  ;;  %v1129_v45 = vpop.f32.mrb[15].mxu1 }
 0x3ed   :  { %1153 = vst [vmem:[#allocation11] sm:$0xff] %v1149_v42  ;;  %v1765_v46 = vadd.f32 %v1129_v45, %v2119_v63 }
 0x3ee   :  { %v1152_v47 = vadd.f32 %v1764_v44, %v1221_v37 }
 0x3ef   :  { %v1151_v13 = vadd.f32 %v1765_v46, %v1221_v37 }
 0x3f0   :  { %1156 = vst [vmem:[#allocation11 + $0x18] sm:$0xff] %v1152_v47 }
 0x3f1   :  { %1155 = vst [vmem:[#allocation11 + $0x10] sm:$0xff] %v1151_v13 }
 0x3f2   :  { %1907 = shalt.err (!%p1904_p2)
}
 0x3f3   :  { %s1908_s21 = scalar_lea.hbm %s2165_s7, 512 }
 0x3f4   :  { %p1909_p3 = scmp.ne.s32.totalorder %s2165_s7, %s1908_s21  ;;  %p1912_p4 = scmp.lt.u32.totalorder %s1908_s21, %s2165_s7 }
 0x3f6   :  { %p1914_p5 = pnand %p1912_p4, %p1909_p3 }
 0x3f8   :  { %1917 = shalt.err (!%p1914_p5)
}
 0x3f9   :  { %1180 = dma.vmem_to_hbm [thread:$0]  %s1175_s19, 512, %s2165_s7, [#allocation12], %s1930_s13, %s1930_s13, %s1931_s14  }
 0x3fa   :  { %1924 = dma.done.wait [#allocation4], 512  }
 0x3fb   :  { %1925 = vsyncadd [#allocation4], 4294966784 }
 0x3fc   :  { %1926 = dma.done.wait [#allocation12], 512  }
 0x3fd   :  { %1927 = vsyncadd [#allocation12], 4294966784 }
 0x3fe   :  { %1187 = vsyncpa [#allocation3], 1 }
 0x3ff   :  { %1188 = vsyncpa [#allocation6], 1 }
 0x400   :  { %1189 = vsyncpa [#allocation9], 1 }
 0x401   :  { %1190 = vsyncpa [#allocation4], 1 }
 0x402   :  { %1191 = vsyncpa [#allocation12], 1 }

</bundles_post_ra>
